<compile_context>
chip_gen: v7x
topology: tpu7x:2x2x1
jax: 0.10.0
libtpu: 0.0.40
codegen_flags: <defaults>
</compile_context>

<pallas_src>
import jax
import jax.numpy as jnp
from jax.experimental import pallas as pl
from jax.experimental.pallas import tpu as pltpu


def _round_up(n, m):
    return (n + m - 1) // m * m


def _round_down(n, m):
    return n // m * m


# -----------------------------------------------------------------------------
# Parameter packing: one resident (R, 128) f32 slab, transposed (out, in) layout.
# -----------------------------------------------------------------------------
def pack_params(p):
    """Pack all weights/biases (transposed) into a single (R, 128) f32 slab.

    Returns (slab, layout) where layout maps name -> (row_offset, (rows, cols)).
    Row offsets are 8-aligned so in-kernel static slices stay sublane-aligned.
    NOTE: assumes every transposed parameter is <= 128 columns wide, i.e.
    2*H <= 128 (H <= 64).  H is config-driven; the assert below guards it.
    """
    entries = [
        ("w1t",  jnp.asarray(p["w1"]).T),    # (H, 1)     Linear(1, H) weight
        ("b1t",  jnp.asarray(p["b1"]).T),    # (H, 1)
        ("w2t",  jnp.asarray(p["w2"]).T),    # (2H, H)
        ("b2t",  jnp.asarray(p["b2"]).T),    # (2H, 1)
        ("w3t",  jnp.asarray(p["w3"]).T),    # (H, 2H)
        ("b3t",  jnp.asarray(p["b3"]).T),    # (H, 1)
        ("d1t",  jnp.asarray(p["d1"]).T),    # (H/2, H)
        ("db1t", jnp.asarray(p["db1"]).T),   # (H/2, 1)
        ("d2t",  jnp.asarray(p["d2"]).T),    # (H/4, H/2)
        ("db2t", jnp.asarray(p["db2"]).T),   # (H/4, 1)
        ("d3c",  jnp.asarray(p["d3t"]).T),   # (H/4, 1)   Linear(H/4, 1) weight as a column
        ("db3",  jnp.asarray(p["db3"])),     # (1, 1)
    ]
    C = 128
    layout = {}
    rows_total = 0
    for name, a in entries:
        r, c = a.shape
        assert c <= C, "parameter wider than packed slab (requires 2*H <= 128)"
        layout[name] = (rows_total, (r, c))
        rows_total += _round_up(r, 8)
    rows_total = _round_up(rows_total, 8)
    slab = jnp.zeros((rows_total, C), jnp.float32)
    for name, a in entries:
        r0, (r, c) = layout[name]
        slab = slab.at[r0:r0 + r, 0:c].set(a.astype(jnp.float32))
    return slab, layout


# -----------------------------------------------------------------------------
# Kernel (transposed layout: features on sublanes, batch-tile on lanes)
# -----------------------------------------------------------------------------
def make_time_tokenizer_kernel(layout, matmul_dtype):
    def get(p_ref, name):
        r0, (r, c) = layout[name]
        return p_ref[r0:r0 + r, 0:c]

    def kernel(x_ref, p_ref, enc_ref, dec_ref):
        x = x_ref[...]                                          # (1, TB) f32

        # ---- encoder ----
        # Linear(1, H): degenerate contraction -> broadcast multiply (VPU, f32).
        w1t = get(p_ref, "w1t")                                 # (H, 1)
        b1t = get(p_ref, "b1t")                                 # (H, 1)
        h1 = jnp.maximum(w1t * x + b1t, 0.0)                    # (H, TB)

        # MXU dots take bf16 operands; accumulate / bias / ReLU in f32.
        w2t = get(p_ref, "w2t").astype(matmul_dtype)            # (2H, H)
        h2 = jnp.dot(w2t, h1.astype(matmul_dtype),
                     preferred_element_type=jnp.float32)        # (2H, TB)
        h2 = jnp.maximum(h2 + get(p_ref, "b2t"), 0.0)

        w3t = get(p_ref, "w3t").astype(matmul_dtype)            # (H, 2H)
        logits = jnp.dot(w3t, h2.astype(matmul_dtype),
                         preferred_element_type=jnp.float32)    # (H, TB)
        logits = logits + get(p_ref, "b3t")

        # softmax over the feature (sublane) axis -- all f32, exact reciprocal
        m = jnp.max(logits, axis=0, keepdims=True)              # (1, TB)
        e = jnp.exp(logits - m)                                 # (H, TB)
        denom = jnp.sum(e, axis=0, keepdims=True)               # (1, TB)
        enc = e * pl.reciprocal(denom, approx=False)
        enc_ref[...] = enc

        # ---- decoder (Dropout == identity in eval mode) ----
        d1t = get(p_ref, "d1t").astype(matmul_dtype)            # (H/2, H)
        g1 = jnp.dot(d1t, enc.astype(matmul_dtype),
                     preferred_element_type=jnp.float32)        # (H/2, TB)
        g1 = jnp.maximum(g1 + get(p_ref, "db1t"), 0.0)
        d2t = get(p_ref, "d2t").astype(matmul_dtype)            # (H/4, H/2)
        g2 = jnp.dot(d2t, g1.astype(matmul_dtype),
                     preferred_element_type=jnp.float32)        # (H/4, TB)
        g2 = jnp.maximum(g2 + get(p_ref, "db2t"), 0.0)
        # Linear(H/4, 1): output dim 1 -> elementwise mul + sublane reduce (f32).
        dec = jnp.sum(g2 * get(p_ref, "d3c"), axis=0, keepdims=True) \
            + get(p_ref, "db3")                                 # (1, TB)
        dec_ref[...] = dec

    return kernel


# -----------------------------------------------------------------------------
# Wrapper: batch grid, resident packed params, lane-dense outputs.
# -----------------------------------------------------------------------------
def time_tokenizer_forward(x, params, *, block_b=2048, lane_major=False,
                           matmul_dtype=jnp.bfloat16):
    """x: (B, 1) f32.

    Returns (encoded, decoded):
      lane_major=False (default, caller-facing PyTorch layout): (B, H), (B, 1)
      lane_major=True  (fast path, no wrapper transpose):       (H, B), (1, B)

    block_b is the batch-tile (lane) width and the primary performance knob;
    sweep it first (2048..8192 for large B).
    """
    assert block_b % 128 == 0 and block_b > 0
    B = x.shape[0]
    H = params["w1"].shape[1]

    slab, layout = pack_params(params)

    # --- batch tile selection ---
    B128 = _round_up(max(B, 1), 128)
    if B128 >= 256:
        # v7x: cap the tile at half the padded batch (rounded to 128) so the
        # "parallel" grid axis has >= 2 steps and shards across both TensorCores.
        tb = min(block_b, max(128, _round_down(B128 // 2, 128)))
    else:
        tb = min(block_b, B128)
    Bp = _round_up(B128, tb)

    # Transpose x to the lane-dense (1, B) layout and pad batch to a tile multiple.
    x_t = jnp.zeros((1, Bp), jnp.float32).at[0, :B].set(
        x[:, 0].astype(jnp.float32))

    kernel = make_time_tokenizer_kernel(layout, matmul_dtype)
    enc_t, dec_t = pl.pallas_call(
        kernel,
        out_shape=(jax.ShapeDtypeStruct((H, Bp), jnp.float32),
                   jax.ShapeDtypeStruct((1, Bp), jnp.float32)),
        grid=(Bp // tb,),
        in_specs=[
            pl.BlockSpec((1, tb), lambda i: (0, i)),          # batch tile of x
            # Constant index_map -> fetched once, stays resident in VMEM.
            # TODO(synk): pipeline_mode=pl.Buffered(1) would drop the redundant
            # (~160 KiB) second buffer; left at the default for lowering robustness.
            pl.BlockSpec(slab.shape, lambda i: (0, 0)),
        ],
        out_specs=(
            pl.BlockSpec((H, tb), lambda i: (0, i)),          # lane-dense enc tile
            pl.BlockSpec((1, tb), lambda i: (0, i)),          # lane-dense dec tile
        ),
        compiler_params=pltpu.CompilerParams(
            dimension_semantics=("parallel",),                # megacore sharding on v7x
            vmem_limit_bytes=32 * 1024 * 1024,                # safe on v5e/v6e/v7x
        ),
    )(x_t, slab)

    if lane_major:
        # Fast path: hand back the kernel's lane-dense layout and skip the extra
        # XLA transpose over the dominant enc payload (~3x HBM bytes for that op).
        return enc_t[:, :B], dec_t[:, :B]

    # Caller-facing PyTorch layout (layout plumbing only).
    enc = enc_t[:, :B].T                                      # (B, H)
    dec = dec_t[:, :B].T                                      # (B, 1)
    return enc, dec


# -----------------------------------------------------------------------------
# Params + pure-JAX reference
# -----------------------------------------------------------------------------
def make_params(key, num_float_tokens=32):
    H = num_float_tokens
    ks = jax.random.split(key, 12)
    s = 0.1
    return {
        "w1":  s * jax.random.normal(ks[0],  (1, H),           jnp.float32),
        "b1":  s * jax.random.normal(ks[1],  (1, H),           jnp.float32),
        "w2":  s * jax.random.normal(ks[2],  (H, 2 * H),       jnp.float32),
        "b2":  s * jax.random.normal(ks[3],  (1, 2 * H),       jnp.float32),
        "w3":  s * jax.random.normal(ks[4],  (2 * H, H),       jnp.float32),
        "b3":  s * jax.random.normal(ks[5],  (1, H),           jnp.float32),
        "d1":  s * jax.random.normal(ks[6],  (H, H // 2),      jnp.float32),
        "db1": s * jax.random.normal(ks[7],  (1, H // 2),      jnp.float32),
        "d2":  s * jax.random.normal(ks[8],  (H // 2, H // 4), jnp.float32),
        "db2": s * jax.random.normal(ks[9],  (1, H // 4),      jnp.float32),
        "d3t": s * jax.random.normal(ks[10], (1, H // 4),      jnp.float32),  # Linear(H/4,1) weight (out,in)
        "db3": s * jax.random.normal(ks[11], (1, 1),           jnp.float32),
    }


def reference_forward(x, p):
    h = jnp.maximum(x @ p["w1"] + p["b1"], 0.0)
    h = jnp.maximum(h @ p["w2"] + p["b2"], 0.0)
    logits = h @ p["w3"] + p["b3"]
    enc = jax.nn.softmax(logits, axis=-1)
    g = jnp.maximum(enc @ p["d1"] + p["db1"], 0.0)
    g = jnp.maximum(g @ p["d2"] + p["db2"], 0.0)
    dec = g @ p["d3t"].T + p["db3"]
    return enc, dec


if __name__ == "__main__":
    key = jax.random.PRNGKey(0)
    k_param, k_x = jax.random.split(key)

    num_float_tokens = 32   # == input_dim (required for forward() to compose)
    batch = 200             # not a multiple of the tile -> exercises batch padding
    params = make_params(k_param, num_float_tokens)
    x = jax.random.uniform(k_x, (batch, 1), jnp.float32)   # scalar "time" values

    # Default path (caller-facing (B, H) / (B, 1) layout).
    enc, dec = time_tokenizer_forward(x, params)
    jax.block_until_ready((enc, dec))

    enc_ref, dec_ref = reference_forward(x, params)
    assert enc.shape == (batch, num_float_tokens) and dec.shape == (batch, 1)
    # bf16 MXU inputs -> looser tolerances than the pure-f32 variant; softmax
    # normalization itself stays exact f32 (rows sum to 1).
    assert jnp.allclose(enc, enc_ref, atol=5e-3, rtol=5e-2), \
        float(jnp.max(jnp.abs(enc - enc_ref)))
    assert jnp.allclose(dec, dec_ref, atol=5e-3, rtol=5e-2), \
        float(jnp.max(jnp.abs(dec - dec_ref)))
    assert jnp.allclose(jnp.sum(enc, axis=-1), 1.0, atol=1e-5)

    # Lane-major fast path (no wrapper transpose) -- same numerics.
    enc_lm, dec_lm = time_tokenizer_forward(x, params, lane_major=True)
    jax.block_until_ready((enc_lm, dec_lm))
    assert enc_lm.shape == (num_float_tokens, batch) and dec_lm.shape == (1, batch)
    assert jnp.allclose(enc_lm.T, enc, atol=1e-6)
    assert jnp.allclose(dec_lm.T, dec, atol=1e-6)

    print("KERNEL_OK")
</pallas_src>

<mosaic_0001>
module attributes {stable_mosaic.version = 11 : i64} {
  func.func @kernel(%arg0: i32, %arg1: memref<1x128xf32, #tpu.memory_space<vmem>>, %arg2: memref<320x128xf32, #tpu.memory_space<vmem>>, %arg3: memref<32x128xf32, #tpu.memory_space<vmem>>, %arg4: memref<1x128xf32, #tpu.memory_space<vmem>>) attributes {dimension_semantics = [#tpu.dimension_semantics<parallel>], iteration_bounds = array<i64: 2>, scalar_prefetch = 0 : i64, scratch_operands = 0 : i64, tpu.core_type = #tpu.core_type<tc>, window_params = [{transform_indices = @transform_0, window_bounds = array<i64: 1, 128>}, {pipeline_mode = #tpu.pipeline_mode<synchronous>, transform_indices = @transform_1, window_bounds = array<i64: 320, 128>}, {transform_indices = @transform_2, window_bounds = array<i64: 32, 128>}, {transform_indices = @transform_3, window_bounds = array<i64: 1, 128>}]} {
    %c0 = arith.constant 0 : index
    %c0_0 = arith.constant 0 : index
    %0 = vector.load %arg1[%c0, %c0_0] : memref<1x128xf32, #tpu.memory_space<vmem>>, vector<1x128xf32>
    %c0_1 = arith.constant 0 : index
    %c0_2 = arith.constant 0 : index
    %1 = vector.load %arg2[%c0_1, %c0_2] : memref<320x128xf32, #tpu.memory_space<vmem>>, vector<32x1xf32>
    %c32 = arith.constant 32 : index
    %c0_3 = arith.constant 0 : index
    %2 = vector.load %arg2[%c32, %c0_3] : memref<320x128xf32, #tpu.memory_space<vmem>>, vector<32x1xf32>
    %3 = vector.broadcast %1 : vector<32x1xf32> to vector<32x128xf32>
    %4 = vector.broadcast %0 : vector<1x128xf32> to vector<32x128xf32>
    %5 = arith.mulf %3, %4 : vector<32x128xf32>
    %6 = vector.broadcast %2 : vector<32x1xf32> to vector<32x128xf32>
    %7 = arith.addf %5, %6 : vector<32x128xf32>
    %cst = arith.constant 0.000000e+00 : f32
    %8 = vector.broadcast %cst : f32 to vector<32x128xf32>
    %9 = arith.maximumf %7, %8 : vector<32x128xf32>
    %c64 = arith.constant 64 : index
    %c0_4 = arith.constant 0 : index
    %10 = vector.load %arg2[%c64, %c0_4] : memref<320x128xf32, #tpu.memory_space<vmem>>, vector<64x32xf32>
    %11 = arith.truncf %10 : vector<64x32xf32> to vector<64x32xbf16>
    %12 = arith.truncf %9 : vector<32x128xf32> to vector<32x128xbf16>
    %cst_5 = arith.constant dense<0.000000e+00> : vector<64x128xf32>
    %13 = tpu.matmul %11, %12, %cst_5 {dimension_numbers = #tpu.dot_dimension_numbers<[1], [0], [0], [1], [0, 0, 1, 1], [], []>} : vector<64x32xbf16>, vector<32x128xbf16>, vector<64x128xf32> -> vector<64x128xf32>
    %c128 = arith.constant 128 : index
    %c0_6 = arith.constant 0 : index
    %14 = vector.load %arg2[%c128, %c0_6] : memref<320x128xf32, #tpu.memory_space<vmem>>, vector<64x1xf32>
    %15 = vector.broadcast %14 : vector<64x1xf32> to vector<64x128xf32>
    %16 = arith.addf %13, %15 : vector<64x128xf32>
    %cst_7 = arith.constant 0.000000e+00 : f32
    %17 = vector.broadcast %cst_7 : f32 to vector<64x128xf32>
    %18 = arith.maximumf %16, %17 : vector<64x128xf32>
    %c192 = arith.constant 192 : index
    %c0_8 = arith.constant 0 : index
    %19 = vector.load %arg2[%c192, %c0_8] : memref<320x128xf32, #tpu.memory_space<vmem>>, vector<32x64xf32>
    %20 = arith.truncf %19 : vector<32x64xf32> to vector<32x64xbf16>
    %21 = arith.truncf %18 : vector<64x128xf32> to vector<64x128xbf16>
    %cst_9 = arith.constant dense<0.000000e+00> : vector<32x128xf32>
    %22 = tpu.matmul %20, %21, %cst_9 {dimension_numbers = #tpu.dot_dimension_numbers<[1], [0], [0], [1], [0, 0, 1, 1], [], []>} : vector<32x64xbf16>, vector<64x128xbf16>, vector<32x128xf32> -> vector<32x128xf32>
    %c224 = arith.constant 224 : index
    %c0_10 = arith.constant 0 : index
    %23 = vector.load %arg2[%c224, %c0_10] : memref<320x128xf32, #tpu.memory_space<vmem>>, vector<32x1xf32>
    %24 = vector.broadcast %23 : vector<32x1xf32> to vector<32x128xf32>
    %25 = arith.addf %22, %24 : vector<32x128xf32>
    %cst_11 = arith.constant dense<0xFF800000> : vector<128xf32>
    %26 = vector.multi_reduction <maximumf>, %25, %cst_11 [0] : vector<32x128xf32> to vector<128xf32>
    %27 = vector.shape_cast %26 : vector<128xf32> to vector<1x128xf32>
    %28 = vector.broadcast %27 : vector<1x128xf32> to vector<32x128xf32>
    %29 = arith.subf %25, %28 : vector<32x128xf32>
    %30 = math.exp %29 : vector<32x128xf32>
    %cst_12 = arith.constant dense<0.000000e+00> : vector<128xf32>
    %31 = vector.multi_reduction <add>, %30, %cst_12 [0] : vector<32x128xf32> to vector<128xf32>
    %32 = vector.shape_cast %31 : vector<128xf32> to vector<1x128xf32>
    %33 = tpu.reciprocal %32 : vector<1x128xf32> -> vector<1x128xf32>
    %34 = vector.broadcast %33 : vector<1x128xf32> to vector<32x128xf32>
    %35 = arith.mulf %30, %34 : vector<32x128xf32>
    %c0_13 = arith.constant 0 : index
    %c0_14 = arith.constant 0 : index
    %36 = vector.load %arg3[%c0_13, %c0_14] : memref<32x128xf32, #tpu.memory_space<vmem>>, vector<32x128xf32>
    tpu.vector_store %arg3[%c0_13, %c0_14], %35 {strides = array<i32>} : memref<32x128xf32, #tpu.memory_space<vmem>>, vector<32x128xf32>,
    %c256 = arith.constant 256 : index
    %c0_15 = arith.constant 0 : index
    %37 = vector.load %arg2[%c256, %c0_15] : memref<320x128xf32, #tpu.memory_space<vmem>>, vector<16x32xf32>
    %38 = arith.truncf %37 : vector<16x32xf32> to vector<16x32xbf16>
    %39 = arith.truncf %35 : vector<32x128xf32> to vector<32x128xbf16>
    %cst_16 = arith.constant dense<0.000000e+00> : vector<16x128xf32>
    %40 = tpu.matmul %38, %39, %cst_16 {dimension_numbers = #tpu.dot_dimension_numbers<[1], [0], [0], [1], [0, 0, 1, 1], [], []>} : vector<16x32xbf16>, vector<32x128xbf16>, vector<16x128xf32> -> vector<16x128xf32>
    %c272 = arith.constant 272 : index
    %c0_17 = arith.constant 0 : index
    %41 = vector.load %arg2[%c272, %c0_17] : memref<320x128xf32, #tpu.memory_space<vmem>>, vector<16x1xf32>
    %42 = vector.broadcast %41 : vector<16x1xf32> to vector<16x128xf32>
    %43 = arith.addf %40, %42 : vector<16x128xf32>
    %cst_18 = arith.constant 0.000000e+00 : f32
    %44 = vector.broadcast %cst_18 : f32 to vector<16x128xf32>
    %45 = arith.maximumf %43, %44 : vector<16x128xf32>
    %c288 = arith.constant 288 : index
    %c0_19 = arith.constant 0 : index
    %46 = vector.load %arg2[%c288, %c0_19] : memref<320x128xf32, #tpu.memory_space<vmem>>, vector<8x16xf32>
    %47 = arith.truncf %46 : vector<8x16xf32> to vector<8x16xbf16>
    %48 = arith.truncf %45 : vector<16x128xf32> to vector<16x128xbf16>
    %cst_20 = arith.constant dense<0.000000e+00> : vector<8x128xf32>
    %49 = tpu.matmul %47, %48, %cst_20 {dimension_numbers = #tpu.dot_dimension_numbers<[1], [0], [0], [1], [0, 0, 1, 1], [], []>} : vector<8x16xbf16>, vector<16x128xbf16>, vector<8x128xf32> -> vector<8x128xf32>
    %c296 = arith.constant 296 : index
    %c0_21 = arith.constant 0 : index
    %50 = vector.load %arg2[%c296, %c0_21] : memref<320x128xf32, #tpu.memory_space<vmem>>, vector<8x1xf32>
    %51 = vector.broadcast %50 : vector<8x1xf32> to vector<8x128xf32>
    %52 = arith.addf %49, %51 : vector<8x128xf32>
    %cst_22 = arith.constant 0.000000e+00 : f32
    %53 = vector.broadcast %cst_22 : f32 to vector<8x128xf32>
    %54 = arith.maximumf %52, %53 : vector<8x128xf32>
    %c304 = arith.constant 304 : index
    %c0_23 = arith.constant 0 : index
    %55 = vector.load %arg2[%c304, %c0_23] : memref<320x128xf32, #tpu.memory_space<vmem>>, vector<8x1xf32>
    %56 = vector.broadcast %55 : vector<8x1xf32> to vector<8x128xf32>
    %57 = arith.mulf %54, %56 : vector<8x128xf32>
    %cst_24 = arith.constant dense<0.000000e+00> : vector<128xf32>
    %58 = vector.multi_reduction <add>, %57, %cst_24 [0] : vector<8x128xf32> to vector<128xf32>
    %59 = vector.shape_cast %58 : vector<128xf32> to vector<1x128xf32>
    %c312 = arith.constant 312 : index
    %c0_25 = arith.constant 0 : index
    %60 = vector.load %arg2[%c312, %c0_25] : memref<320x128xf32, #tpu.memory_space<vmem>>, vector<1x1xf32>
    %61 = vector.broadcast %60 : vector<1x1xf32> to vector<1x128xf32>
    %62 = arith.addf %59, %61 : vector<1x128xf32>
    %c0_26 = arith.constant 0 : index
    %c0_27 = arith.constant 0 : index
    %63 = vector.load %arg4[%c0_26, %c0_27] : memref<1x128xf32, #tpu.memory_space<vmem>>, vector<1x128xf32>
    tpu.vector_store %arg4[%c0_26, %c0_27], %62 {strides = array<i32>} : memref<1x128xf32, #tpu.memory_space<vmem>>, vector<1x128xf32>,
    return
  }
  func.func @transform_0(%arg0: i32) -> (i32, i32) {
    %c0_i32 = arith.constant 0 : i32
    %c0_i32_0 = arith.constant 0 : i32
    return %c0_i32, %arg0 : i32, i32
  }
  func.func @transform_1(%arg0: i32) -> (i32, i32) {
    %c0_i32 = arith.constant 0 : i32
    %c0_i32_0 = arith.constant 0 : i32
    %c0_i32_1 = arith.constant 0 : i32
    return %c0_i32, %c0_i32_0 : i32, i32
  }
  func.func @transform_2(%arg0: i32) -> (i32, i32) {
    %c0_i32 = arith.constant 0 : i32
    %c0_i32_0 = arith.constant 0 : i32
    return %c0_i32, %arg0 : i32, i32
  }
  func.func @transform_3(%arg0: i32) -> (i32, i32) {
    %c0_i32 = arith.constant 0 : i32
    %c0_i32_0 = arith.constant 0 : i32
    return %c0_i32, %arg0 : i32, i32
  }
}

</mosaic_0001>

<bundles_post_ra>
// kernel: tpu_custom_call.1
= control target key start
LH: loop header
LB: loop body
LE: loop exit
PB: predicated region body
PF: predicated region fallthrough
CT: control target
= control target key end

     0   :  { %9 = vsyncpa [#allocation3], 0  ;;  %s1433_s0 = inlined_call_operand.hbm [shape: f32[1,256], index: 0, kind: input, shape index: {}]   ;;  %s1434_s1 = inlined_call_operand.hbm [shape: f32[320,128], index: 1, kind: input, shape index: {}]   ;;  %s1435_s2 = inlined_call_operand.hbm [shape: f32[32,256], index: 2, kind: output, shape index: {0}]   ;;  %s1436_s3 = inlined_call_operand.hbm [shape: f32[1,256], index: 3, kind: output, shape index: {1}]  }
   0x1   :  { %11 = vsyncpa [#allocation3 + $0x1], 0 }
   0x2   :  { %12 = vsyncpa [#allocation6], 0 }
   0x3   :  { %13 = vsyncpa [#allocation4], 0 }
   0x4   :  { %15 = vsyncpa [#allocation4 + $0x1], 0 }
   0x5   :  { %16 = vsyncpa [#allocation9], 0 }
   0x6   :  { %18 = vsyncpa [#allocation9 + $0x1], 0  ;;  %s1182_s12 = smov 0   ;;  %s1184_s13 = smov 0  }
   0x7   :  { %s1186_s14 = smov 0   ;;  %s1188_s15 = smov 0  }
   0x8 LB: > { %s1203_s16 = sadd.s32 4294967295, %s1148_s15   ;;  %s829_s17 = sadd.s32 4294967294, %s1148_s15   ;;  %s1148_s15 = sphi %s1188_s15, %s1456_s15   ;;  %s1144_s14 = sphi %s1186_s14, %s1455_s14   ;;  %s1140_s13 = sphi %s1184_s13, %s1454_s13   ;;  %s1136_s12 = sphi %s1182_s12, %s1453_s12  }
   0x9   : > { %p44_p0 = scmp.ne.s32.totalorder %s1140_s13, %s1136_s12  ;;  %p1437_p1 = scmp.eq.s32.totalorder %s1203_s16, 0 }
   0xa   : > { %p95_p3 = scmp.eq.s32.totalorder %s829_s17, 1  ;;  %p830_p5 = scmp.ge.s32.totalorder %s1148_s15, 1 }
   0xb   : > { %p1212_p4 = por %p1437_p1, %p44_p0  ;;  %p128_p7 = scmp.lt.s32.totalorder %s1148_s15, 3 }
   0xc   : > { %p1217_p6 = por %p95_p3, %p44_p0  ;;  %s1150_s21 = smov [#allocation5]  }
   0xd   : > { %s1440_s18 = scalar_select %p1212_p4, 1, 0 }
   0xe   : > { %s1441_s19 = scalar_select %p1217_p6, 1, 0 }
   0xf   : > { %p1222_p8 = pnand %p830_p5, %p128_p7  ;;  %s140_s22 = sshll.u32 %s1150_s21, 4  ;;  %s1226_s22 = int_to_ptr.vmem [resolvable:$true] %s140_s22 }
  0x10   : > { %s1238_s24 = sadd.s32 1, %s1148_s15   ;;  %s31_s25 = sadd.s32 1, %s1144_s14 }
  0x11   : > { %s1442_s20 = scalar_select %p1222_p8, 1, 0 }
  0x12   : > { %p916_p9 = pneg %p1222_p8  ;;  %s28_s26 = ssub.s32 %s1148_s15, %s1238_s24 }
  0x13   : > { %s988_s29 = scalar_lea.hbm %s1434_s1, 5120 }
  0x14   : > { %p1233_p11 = pnand %p916_p9, %p1437_p1  ;;  %p989_p12 = scmp.ne.s32.totalorder %s1434_s1, %s988_s29 }
  0x15   : > { %p995_p5 = scmp.lt.u32.totalorder %s988_s29, %s1434_s1 }
  0x16   : > { %p990_p13 = pneg %p1233_p11 }
  0x18   : > { %p991_p0 = pnand %p990_p13, %p989_p12 }
  0x1a   : > { %p992_p3 = pneg %p991_p0 }
  0x1c   : > { %p997_p7 = pnand %p995_p5, %p992_p3 }
  0x1e   : > { %1000 = shalt.err (!%p997_p7)
}
  0x1f   : > { %s1001_s7 = scalar_lea.vmem %s1226_s22, 5120  ;;  %p1009_p2 = scmp.lt.s32.totalorder %s1226_s22, %s1226_s22 }
  0x20   : > { %p1002_p9 = scmp.ne.s32.totalorder %s1226_s22, %s1001_s7  ;;  %p1010_p6 = scmp.lt.s32.totalorder %s1001_s7, %s1001_s7 }
  0x22   : > { %p1004_p10 = pnand %p1002_p9, %p990_p13  ;;  %p1011_p4 = por %p1010_p6, %p1009_p2 }
  0x24   : > { %p1005_p1 = pneg %p1004_p10 }
  0x26   : > { %p1012_p8 = pnand %p1011_p4, %p1005_p1 }
  0x28   : > { %1015 = shalt.err (!%p1012_p8)
}
  0x29   : > { %s1151_s8 = smov 128   ;;  %s1152_s9 = smov 8  }
  0x2a   : > { %919 = dma.hbm_to_vmem [thread:$0]  (!%p1233_p11), %s1434_s1, 5120, %s1226_s22, [#allocation6], %s1151_s8, %s1151_s8, %s1152_s9  }
  0x2b   : > { %p29_p2 = scmp.eq.s32.totalorder %s28_s26, 0  ;;  %p38_p1 = scmp.ne.s32.totalorder %s1144_s14, %s1140_s13 }
  0x2c   : > { %p39_p4 = scmp.eq.s32.totalorder %s1148_s15, 0  ;;  %p932_p6 = scmp.lt.s32.totalorder %s1148_s15, 2 }
  0x2d   : > { %s1269_s17 = scalar_select %p29_p2, %s1144_s14, %s31_s25  }
  0x2e   : > { %p40_p8 = por %p39_p4, %p38_p1  ;;  %p1444_p10 = scmp.eq.s32.totalorder %s1203_s16, 1 }
  0x2f   : > { %s154_s27 = sand.u32 1, %s1144_s14   ;;  %s833_s28 = sshll.u32 %s1148_s15, 4 }
  0x30   : > { %p1273_p12 = por %p1444_p10, %p38_p1  ;;  %s1282_s30 = scalar_lea.hbm %s1433_s0, %s833_s28 }
  0x31   : > { %s157_s22 = scalar_lea.vmem [#allocation2], %s154_s27  ;;  %p1286_p11 = pnand %p932_p6, %p40_p8 }
  0x32   : > { %s164_s25 = sshll.u32 %s157_s22, 4  ;;  %s155_s4 = scalar_lea.sflag [#allocation3], %s154_s27  ;;  %s1284_s25 = int_to_ptr.vmem [resolvable:$true] %s164_s25 }
  0x33   : > { %s1016_s5 = scalar_lea.hbm %s1282_s30, 16  ;;  %p1018_p0 = pneg %p1286_p11 }
  0x34   : > { %p1017_p13 = scmp.ne.s32.totalorder %s1282_s30, %s1016_s5  ;;  %s1021_s8 = scalar_lea.hbm %s1433_s0, 32 }
  0x35   : > { %p1022_p7 = scmp.lt.u32.totalorder %s1282_s30, %s1433_s0  ;;  %p1023_p9 = scmp.lt.u32.totalorder %s1021_s8, %s1016_s5 }
  0x36   : > { %p1019_p3 = pnand %p1018_p0, %p1017_p13  ;;  %p1025_p1 = scmp.lt.u32.totalorder %s1016_s5, %s1282_s30 }
  0x37   : > { %p1024_p2 = por %p1023_p9, %p1022_p7 }
  0x38   : > { %p1020_p5 = pneg %p1019_p3 }
  0x39   : > { %p1026_p4 = por %p1025_p1, %p1024_p2 }
  0x3b   : > { %p1027_p6 = pnand %p1026_p4, %p1020_p5 }
  0x3d   : > { %1030 = shalt.err (!%p1027_p6)
}
  0x3e   : > { %s1031_s11 = scalar_lea.vmem %s1284_s25, 16  ;;  %s1153_s27 = smov [#allocation2]  }
  0x3f   : > { %p1032_p8 = scmp.ne.s32.totalorder %s1284_s25, %s1031_s11  ;;  %s1036_s28 = sshll.u32 %s1153_s27, 4  ;;  %s1037_s28 = int_to_ptr.vmem [resolvable:$false] %s1036_s28 }
  0x40   : > { %s1038_s29 = scalar_lea.vmem %s1037_s28, 32  ;;  %p1039_p3 = scmp.lt.s32.totalorder %s1284_s25, %s1037_s28 }
  0x41   : > { %p1034_p10 = pnand %p1032_p8, %p1018_p0  ;;  %p1040_p7 = scmp.lt.s32.totalorder %s1038_s29, %s1031_s11 }
  0x43   : > { %p1035_p13 = pneg %p1034_p10  ;;  %p1041_p9 = por %p1040_p7, %p1039_p3 }
  0x45   : > { %p1042_p2 = pnand %p1041_p9, %p1035_p13 }
  0x47   : > { %1045 = shalt.err (!%p1042_p2)
}
  0x48   : > { %923 = dma.hbm_to_vmem [thread:$0]  (!%p1286_p11), %s1282_s30, 16, %s1284_s25, %s155_s4  }
  0x49   : > { %p1447_p5 = scmp.ne.s32.totalorder %s1442_s20, 0 }
  0x4a   : > { %s1318_s23 = sand.u32 (!%p1447_p5), 1, %s1140_s13   ;;  %p1448_p0 = scmp.ne.s32.totalorder (!%p1447_p5), %s1440_s18, 0 }
  0x4b   : > { %173 = sbr.rel (%p1447_p5) target bundleno = 1233 (0x4d1), region = 28  ;;  %s176_s22 = scalar_lea.sflag (!%p1447_p5), [#allocation3], %s1318_s23 }
  0x4c   : > { %s178_s5 = scalar_lea.vmem (!%p1447_p5), [#allocation2], %s1318_s23 }
  0x52   : > { %1119 = dma.done.wait (%p1448_p0), %s176_s22, 16  }
  0x53   : > { %1121 = vsyncadd (%p1448_p0), %s176_s22, 4294967280  ;;  %p1449_p1 = scmp.eq.s32.totalorder %s1203_s16, 0 }
  0x55   : > { %1123 = dma.done.wait (%p1449_p1), [#allocation6], 5120   ;;  %p1450_p11 = pmov %p1449_p1 }
  0x56   : > { %v1154_v0 = vmov 0   ;;  %v214_v1 = vld [vmem:[#allocation5 + $0x20] sm:$0xff]  ;;  %v215_v3 = vld [vmem:[#allocation5 + $0x28] sm:$0xff]  ;;  %v213_v5 = vld [vmem:[#allocation5 + $0x18] sm:$0xff]  ;;  %vm338_vm0 = vcmask 261120   ;;  %vm458_vm1 = vcmask 523264  }
  0x57   : > { %1125 = vsyncadd (%p1450_p11), [#allocation6], 4294962176  ;;  %977 = vset.pattern.permute.xlu1 %v1154_v0  ;;  %976 = vset.pattern.permute.xlu0 %v1154_v0  ;;  %v210_v2 = vld [vmem:[#allocation5] sm:$0xff]  ;;  %v211_v4 = vld [vmem:[#allocation5 + $0x8] sm:$0xff]  ;;  %vm1156_vm2 = vmmov 0   ;;  %s836_s18 = sshll.u32 %s1318_s23, 5 }
  0x58   : > { %250 = vperm.xlu1 %977, %v214_v1   ;;  %220 = vperm.xlu0 %976, %v210_v2   ;;  %v212_v6 = vld [vmem:[#allocation5 + $0x10] sm:$0xff]  ;;  %v217_v7 = vld [vmem:[#allocation5 + $0x38] sm:$0xff]  ;;  %v291_v9 = vld [vmem:[#allocation5 + $0x88] sm:$0xff]  ;;  %s1343_s20 = scalar_lea.vmem [#allocation7], %s836_s18  ;;  %vm625_vm3 = vcmask 130048   ;;  %s847_s25 = sshll.u32 %s1203_s16, 7 }
  0x59   : > { %v216_v8 = vld [vmem:[#allocation5 + $0x30] sm:$0xff]  ;;  %v290_v10 = vld [vmem:[#allocation5 + $0x80] sm:$0xff]  ;;  %v293_v11 = vld [vmem:[#allocation5 + $0x98] sm:$0xff]  ;;  %s708_s30 = sshll.u32 %s1343_s20, 4  ;;  %s1358_s6 = scalar_lea.hbm %s1435_s2, %s847_s25  ;;  %s1352_s30 = int_to_ptr.vmem [resolvable:$true] %s708_s30 }
  0x5a   : > { %v292_v12 = vld [vmem:[#allocation5 + $0x90] sm:$0xff]  ;;  %v276_v13 = vld [vmem:[#allocation5 + $0x40] sm:$0xff]  ;;  %v277_v14 = vld [vmem:[#allocation5 + $0x48] sm:$0xff]  ;;  %s692_s7 = scalar_lea.sflag [#allocation4], %s1318_s23  ;;  %s1046_s8 = scalar_lea.vmem %s1352_s30, 512 }
  0x5b   : > { %v284_v15 = vpack.c.bf16 %v277_v14, %v276_v13  ;;  %v295_v16 = vld [vmem:[#allocation5 + $0xa8] sm:$0xff]  ;;  %v294_v17 = vld [vmem:[#allocation5 + $0xa0] sm:$0xff]  ;;  %v297_v18 = vld [vmem:[#allocation5 + $0xb8] sm:$0xff]  ;;  %p1047_p4 = scmp.ne.s32.totalorder %s1352_s30, %s1046_s8  ;;  %s1157_s9 = smov [#allocation7]  }
  0x5c   : > { %255 = vperm.xlu1 %977, %v215_v3   ;;  %225 = vperm.xlu0 %976, %v211_v4   ;;  %v296_v19 = vld [vmem:[#allocation5 + $0xb0] sm:$0xff]  ;;  %v435_v20 = vld [vmem:[#allocation5 + $0xe8] sm:$0xff]  ;;  %v434_v21 = vld [vmem:[#allocation5 + $0xe0] sm:$0xff]  ;;  %s1050_s10 = sshll.u32 %s1157_s9, 4  ;;  %s1051_s10 = int_to_ptr.vmem [resolvable:$false] %s1050_s10 }
  0x5d   : > { %872 = vmatprep.mubr.msk.bf16.mxu0 %vm338_vm0, %v284_v15  ;;  %v437_v22 = vld [vmem:[#allocation5 + $0xf8] sm:$0xff]  ;;  %v436_v23 = vld [vmem:[#allocation5 + $0xf0] sm:$0xff]  ;;  %v619_v27 = vld [vmem:[#allocation5 + $0x128] sm:$0xff]  ;;  %p1048_p6 = pnand %p1047_p4, %p1273_p12  ;;  %s1052_s11 = scalar_lea.vmem %s1051_s10, 1024 }
  0x5e   : > { %v559_v24 = vld [vmem:[#allocation5 + $0x118] sm:$0xff]  ;;  %v558_v25 = vld [vmem:[#allocation5 + $0x110] sm:$0xff]  ;;  %v280_v54 = vld [vmem:[#allocation5 + $0x60] sm:$0xff]  ;;  %p1053_p10 = scmp.lt.s32.totalorder %s1352_s30, %s1051_s10  ;;  %p1054_p13 = scmp.lt.s32.totalorder %s1052_s11, %s1046_s8 }
  0x5f   : > { %v670_v26 = vld [vmem:[#allocation5 + $0x130] sm:$0xff]  ;;  %v683_v28 = vld [vmem:[#allocation5 + $0x138] sm:$0x1]  ;;  %v837_v29 = vld [vmem:[%s178_s5] ss:$0 sm:$0xff]  ;;  %p1049_p8 = pneg %p1048_p6 }
  0x60   : > { %235 = vperm.xlu1 %977, %v213_v5   ;;  %230 = vperm.xlu0 %976, %v212_v6   ;;  %v278_v51 = vld [vmem:[#allocation5 + $0x50] sm:$0xff]  ;;  %v279_v52 = vld [vmem:[#allocation5 + $0x58] sm:$0xff]  ;;  %v281_v55 = vld [vmem:[#allocation5 + $0x68] sm:$0xff]  ;;  %p1055_p3 = por %p1054_p13, %p1053_p10 }
  0x61   : > { %v285_v56 = vpack.c.bf16 %v279_v52, %v278_v51  ;;  %v286_v57 = vpack.c.bf16 %v281_v55, %v280_v54  ;;  %v282_v58 = vld [vmem:[#allocation5 + $0x70] sm:$0xff]  ;;  %v283_v59 = vld [vmem:[#allocation5 + $0x78] sm:$0xff]  ;;  %v424_v61 = vld [vmem:[#allocation5 + $0xc0] sm:$0xff] }
  0x62   : > { %v287_v60 = vpack.c.bf16 %v283_v59, %v282_v58  ;;  %v425_v62 = vld [vmem:[#allocation5 + $0xc8] sm:$0xff]  ;;  %p1056_p7 = pnand %p1055_p3, %p1049_p8 }
  0x63   : > { %v428_v63 = vpack.c.bf16 %v425_v62, %v424_v61 }
  0x64   : > { %265 = vperm.xlu1 %977, %v217_v7   ;;  %260 = vperm.xlu0 %976, %v216_v8  }
  0x65   : > { %888 = vmatprep.mubr.msk.bf16.mxu1 %vm458_vm1, %v428_v63 }
  0x68   : > { %305 = vperm.xlu1 %977, %v291_v9   ;;  %300 = vperm.xlu0 %976, %v290_v10  }
  0x6c   : > { %315 = vperm.xlu1 %977, %v293_v11   ;;  %310 = vperm.xlu0 %976, %v292_v12  }
  0x70   : > { %325 = vperm.xlu1 %977, %v295_v16   ;;  %320 = vperm.xlu0 %976, %v294_v17  }
  0x74   : > { %335 = vperm.xlu1 %977, %v297_v18   ;;  %330 = vperm.xlu0 %976, %v296_v19  }
  0x78   : > { %445 = vperm.xlu1 %977, %v435_v20   ;;  %440 = vperm.xlu0 %976, %v434_v21  }
  0x7c   : > { %455 = vperm.xlu1 %977, %v437_v22   ;;  %450 = vperm.xlu0 %976, %v436_v23  }
  0x80   : > { %567 = vperm.xlu1 %977, %v559_v24   ;;  %562 = vperm.xlu0 %976, %v558_v25  }
  0x84   : > { %673 = vperm.xlu1 %977, %v670_v26   ;;  %622 = vperm.xlu0 %976, %v619_v27  }
  0x88   : > { %686 = vperm.xlu0 %976, %v683_v28  }
  0xd7   : > { %v251_v30 = vpop.permute.xlu1 %250  ;;  %v221_v31 = vpop.permute.xlu0 %220 }
  0xd8   : > { %v244_v32 = vmul.f32 %v837_v29, %v221_v31 }
  0xda   : > { %v268_v35 = vadd.f32 %v251_v30, %v244_v32 }
  0xdb   : > { %v256_v33 = vpop.permute.xlu1 %255  ;;  %v226_v34 = vpop.permute.xlu0 %225 }
  0xdc   : > { %v245_v36 = vmul.f32 %v837_v29, %v226_v34  ;;  %v272_v40 = vmax.f32 %v268_v35, 0.0 }
  0xde   : > { %v269_v37 = vadd.f32 %v256_v33, %v245_v36  ;;  %v426_v36 = vld [vmem:[#allocation5 + $0xd0] sm:$0xff] }
  0xdf   : > { %v236_v38 = vpop.permute.xlu1 %235  ;;  %v231_v39 = vpop.permute.xlu0 %230 }
  0xe0   : > { %v273_v41 = vmax.f32 %v269_v37, 0.0  ;;  %v247_v42 = vmul.f32 %v837_v29, %v236_v38  ;;  %v246_v43 = vmul.f32 %v837_v29, %v231_v39  ;;  %v427_v37 = vld [vmem:[#allocation5 + $0xd8] sm:$0xff]  ;;  %v1155_v39 = vmov 0.0  }
  0xe1   : > { %v429_v38 = vpack.c.bf16 %v427_v37, %v426_v36 }
  0xe2   : > { %v288_v44 = vpack.c.bf16 %v273_v41, %v272_v40 }
  0xe3   : > { %v266_v45 = vpop.permute.xlu1 %265  ;;  %v261_v46 = vpop.permute.xlu0 %260 }
  0xe4   : > { %v271_v47 = vadd.f32 %v266_v45, %v247_v42  ;;  %v270_v48 = vadd.f32 %v261_v46, %v246_v43  ;;  %868 = vmatprep.subr.bf16.mxu0 %v288_v44 }
  0xe5   : > { %869 = vmatpush3.bf16.msra.mxu0 %v288_v44 }
  0xe6   : > { %v275_v49 = vmax.f32 %v271_v47, 0.0  ;;  %v274_v50 = vmax.f32 %v270_v48, 0.0 }
  0xe7   : > { %v301_v0 = vpop.permute.xlu0 %300  ;;  %v306_v1 = vpop.permute.xlu1 %305 }
  0xe8   : > { %v289_v53 = vpack.c.bf16 %v275_v49, %v274_v50 }
  0xea   : > { %870 = vmatprep.subr.bf16.mxu0 %v289_v53 }
  0xeb   : > { %871 = vmatpush3.bf16.msra.mxu0 %v289_v53  ;;  %v311_v2 = vpop.permute.xlu0 %310  ;;  %v316_v3 = vpop.permute.xlu1 %315 }
  0xec   : > { %892 = vmatprep.subr.bf16.mxu0 %v1155_v39 }
  0xee   : > { %873 = vmatmul.mubr.msk.bf16.vlgmr.msra.gmra.mrb[0].mxu0 %vm338_vm0, %v285_v56 }
  0xef   : > { %876 = vmatprep.mubr.msk.bf16.mxu0 %vm338_vm0, %v286_v57  ;;  %v321_v7 = vpop.permute.xlu0 %320  ;;  %v326_v12 = vpop.permute.xlu1 %325 }
  0xf3   : > { %v331_v19 = vpop.permute.xlu0 %330  ;;  %v336_v24 = vpop.permute.xlu1 %335 }
  0xf6   : > { %877 = vmatmul.mubr.msk.bf16.gmra.mrb[4].mxu0 %vm338_vm0, %v287_v60 }
  0xf7   : > { %896 = vmatprep.mubr.msk.bf16.mxu0 %vm1156_vm2, %v1155_v39  ;;  %v446_v40 = vpop.permute.xlu1 %445  ;;  %v441_v41 = vpop.permute.xlu0 %440 }
  0xfb   : > { %v456_v43 = vpop.permute.xlu1 %455  ;;  %v451_v45 = vpop.permute.xlu0 %450 }
 0x1c1   : > { %v874_v4 = vpop.f32.mrb[0].mxu0 }
 0x1c2   : > { %v394_v5 = vadd.f32 %v874_v4, %v311_v2  ;;  %v385_v6 = vpop.f32.mrb[1].mxu0 }
 0x1c3   : > { %v386_v8 = vadd.f32 %v385_v6, %v301_v0  ;;  %v875_v9 = vpop.f32.mrb[2].mxu0 }
 0x1c4   : > { %v397_v10 = vadd.f32 %v875_v9, %v316_v3  ;;  %v388_v11 = vpop.f32.mrb[3].mxu0  ;;  %v418_v14 = vmax.f32 %v394_v5, 0.0 }
 0x1c5   : > { %v389_v13 = vadd.f32 %v388_v11, %v306_v1  ;;  %v416_v16 = vmax.f32 %v386_v8, 0.0 }
 0x1c6   : > { %v419_v15 = vmax.f32 %v397_v10, 0.0 }
 0x1c7   : > { %v417_v17 = vmax.f32 %v389_v13, 0.0 }
 0x1c8   : > { %v431_v18 = vpack.c.bf16 %v419_v15, %v418_v14 }
 0x1c9   : > { %v878_v20 = vpop.f32.mrb[4].mxu0  ;;  %v430_v21 = vpack.c.bf16 %v417_v17, %v416_v16 }
 0x1ca   : > { %v410_v22 = vadd.f32 %v878_v20, %v331_v19  ;;  %v401_v23 = vpop.f32.mrb[5].mxu0 }
 0x1cb   : > { %v402_v25 = vadd.f32 %v401_v23, %v321_v7  ;;  %v879_v26 = vpop.f32.mrb[6].mxu0  ;;  %880 = vmatprep.subr.bf16.mxu1 %v430_v21 }
 0x1cc   : > { %v413_v27 = vadd.f32 %v879_v26, %v336_v24  ;;  %v404_v28 = vpop.f32.mrb[7].mxu0  ;;  %881 = vmatpush3.bf16.msra.mxu1 %v430_v21  ;;  %v422_v30 = vmax.f32 %v410_v22, 0.0  ;;  %v554_v26 = vld [vmem:[#allocation5 + $0x108] sm:$0xff] }
 0x1cd   : > { %v405_v29 = vadd.f32 %v404_v28, %v326_v12  ;;  %882 = vmatprep.subr.bf16.mxu1 %v431_v18  ;;  %v420_v32 = vmax.f32 %v402_v25, 0.0  ;;  %v553_v25 = vld [vmem:[#allocation5 + $0x100] sm:$0xff]  ;;  %v563_v28 = vpop.permute.xlu0 %562 }
 0x1ce   : > { %v423_v31 = vmax.f32 %v413_v27, 0.0  ;;  %v555_v27 = vpack.c.bf16 %v554_v26, %v553_v25 }
 0x1cf   : > { %v421_v33 = vmax.f32 %v405_v29, 0.0 }
 0x1d0   : > { %v433_v34 = vpack.c.bf16 %v423_v31, %v422_v30  ;;  %883 = vmatpush3.bf16.msra.mxu1 %v431_v18 }
 0x1d1   : > { %v432_v35 = vpack.c.bf16 %v421_v33, %v420_v32  ;;  %v568_v32 = vpop.permute.xlu1 %567 }
 0x1d3   : > { %884 = vmatprep.subr.bf16.mxu1 %v432_v35 }
 0x1d4   : > { %885 = vmatpush3.bf16.msra.mxu1 %v432_v35 }
 0x1d5   : > { %886 = vmatprep.subr.bf16.mxu1 %v433_v34 }
 0x1d8   : > { %887 = vmatpush3.bf16.msra.mxu1 %v433_v34 }
 0x1d9   : > { %900 = vmatprep.subr.bf16.mxu1 %v1155_v39 }
 0x1db   : > { %889 = vmatmul.mubr.msk.bf16.vlgmr.msra.gmra.mrb[0].mxu1 %vm458_vm1, %v429_v38  ;;  %v616_v38 = vld [vmem:[#allocation5 + $0x120] sm:$0xff] }
 0x1dc   : > { %902 = vmatprep.mubr.msk.bf16.mxu1 %vm1156_vm2, %v1155_v39 }
 0x2ae   : > { %v890_v42 = vpop.f32.mrb[0].mxu1 }
 0x2af   : > { %v499_v44 = vpop.f32.mrb[1].mxu1  ;;  %v508_v47 = vadd.f32 %v890_v42, %v451_v45 }
 0x2b0   : > { %v891_v46 = vpop.f32.mrb[2].mxu1  ;;  %v500_v50 = vadd.f32 %v499_v44, %v441_v41 }
 0x2b1   : > { %v511_v48 = vadd.f32 %v891_v46, %v456_v43  ;;  %v502_v49 = vpop.f32.mrb[3].mxu1 }
 0x2b2   : > { %v503_v51 = vadd.f32 %v502_v49, %v446_v40  ;;  %v617_v40 = vpack.c.bf16 %v616_v38, %v616_v38 }
 0x2b3   : > { %v515_v52 = vmax.f32 %v508_v47, %v511_v48 }
 0x2b4   : > { %v514_v53 = vmax.f32 %v500_v50, %v503_v51 }
 0x2b6   : > { %v516_v54 = vmax.f32 %v514_v53, %v515_v52 }
 0x2b8   : > { %v517_v55 = vrot.slane %v516_v54, 4 }
 0x2ba   : > { %v518_v56 = vmax.f32 %v516_v54, %v517_v55 }
 0x2bc   : > { %v519_v57 = vrot.slane %v518_v56, 2 }
 0x2be   : > { %v520_v58 = vmax.f32 %v518_v56, %v519_v57 }
 0x2c0   : > { %v521_v59 = vrot.slane %v520_v58, 1 }
 0x2c2   : > { %v522_v60 = vmax.f32 %v520_v58, %v521_v59 }
 0x2c4   : > { %v523_v61 = vsub.f32 %v500_v50, %v522_v60  ;;  %v524_v62 = vsub.f32 %v503_v51, %v522_v60  ;;  %v525_v63 = vsub.f32 %v508_v47, %v522_v60  ;;  %v526_v0 = vsub.f32 %v511_v48, %v522_v60 }
 0x2c6   : > { %v527_v1 = vmul.f32 1.442695, %v523_v61  ;;  %v529_v2 = vmul.f32 1.442695, %v524_v62  ;;  %v531_v3 = vmul.f32 1.442695, %v525_v63 }
 0x2c7   : > { %v533_v4 = vmul.f32 1.442695, %v526_v0 }
 0x2c8   : > { %978 = vpow2.f32 %v527_v1 }
 0x2c9   : > { %980 = vpow2.f32 %v529_v2 }
 0x2ca   : > { %982 = vpow2.f32 %v531_v3 }
 0x2cb   : > { %984 = vpow2.f32 %v533_v4 }
 0x2d2   : > { %v979_v5 = vpop.eup %978 }
 0x2d3   : > { %v981_v6 = vpop.eup %980 }
 0x2d4   : > { %v535_v7 = vadd.f32 %v981_v6, %v979_v5  ;;  %v983_v8 = vpop.eup %982 }
 0x2d5   : > { %v985_v10 = vpop.eup %984 }
 0x2d6   : > { %v536_v9 = vadd.f32 %v983_v8, %v535_v7 }
 0x2d8   : > { %v537_v11 = vadd.f32 %v985_v10, %v536_v9 }
 0x2da   : > { %v538_v12 = vrot.slane %v537_v11, 4 }
 0x2dc   : > { %v539_v13 = vadd.f32 %v538_v12, %v537_v11 }
 0x2de   : > { %v540_v14 = vrot.slane %v539_v13, 2 }
 0x2e0   : > { %v541_v15 = vadd.f32 %v540_v14, %v539_v13 }
 0x2e2   : > { %v542_v16 = vrot.slane %v541_v15, 1 }
 0x2e4   : > { %v543_v17 = vadd.f32 %v542_v16, %v541_v15 }
 0x2e6   : > { %986 = vrcp.f32 %v543_v17 }
 0x2f0   : > { %v987_v18 = vpop.eup %986 }
 0x2f1   : > { %v545_v19 = vmul.f32 %v987_v18, %v979_v5  ;;  %v546_v20 = vmul.f32 %v987_v18, %v981_v6  ;;  %v547_v21 = vmul.f32 %v987_v18, %v983_v8  ;;  %v548_v22 = vmul.f32 %v987_v18, %v985_v10 }
 0x2f3   : > { %549 = vst [vmem:[%s1343_s20] sm:$0xff] %v545_v19  ;;  %550 = vst [vmem:[%s1343_s20 + $0x8] sm:$0xff] %v546_v20  ;;  %v556_v23 = vpack.c.bf16 %v546_v20, %v545_v19  ;;  %v557_v24 = vpack.c.bf16 %v548_v22, %v547_v21 }
 0x2f4   : > { %551 = vst [vmem:[%s1343_s20 + $0x10] sm:$0xff] %v547_v21  ;;  %552 = vst [vmem:[%s1343_s20 + $0x18] sm:$0xff] %v548_v22 }
 0x2f5   : > { %893 = vmatpush3.bf16.msra.mxu0 %v556_v23 }
 0x2f6   : > { %894 = vmatprep.subr.bf16.mxu0 %v1155_v39 }
 0x2f9   : > { %895 = vmatpush3.bf16.msra.mxu0 %v557_v24 }
 0x2fc   : > { %897 = vmatmul.mubr.msk.bf16.vlgmr.msra.gmra.mrb[8].mxu0 %vm338_vm0, %v555_v27 }
 0x3cf   : > { %v607_v29 = vpop.f32.mrb[8].mxu0 }
 0x3d0   : > { %v608_v30 = vadd.f32 %v607_v29, %v563_v28  ;;  %v898_v31 = vpop.f32.mrb[9].mxu0 }
 0x3d1   : > { %v610_v33 = vpop.f32.mrb[10].mxu0 }
 0x3d2   : > { %v611_v34 = vadd.f32 %v610_v33, %v568_v32  ;;  %v899_v35 = vpop.f32.mrb[11].mxu0  ;;  %v614_v36 = vmax.f32 %v608_v30, 0.0 }
 0x3d4   : > { %v615_v37 = vmax.f32 %v611_v34, 0.0 }
 0x3d6   : > { %v618_v39 = vpack.c.bf16 %v615_v37, %v614_v36 }
 0x3d8   : > { %901 = vmatpush3.bf16.msra.mxu1 %v618_v39 }
 0x3db   : > { %903 = vmatmul.mubr.msk.bf16.vlgmr.msra.gmra.mrb[4].mxu1 %vm625_vm3, %v617_v40 }
 0x3dc   : > { %1059 = shalt.err (!%p1056_p7)
}
 0x3dd   : > { %s1060_s27 = scalar_lea.hbm %s1358_s6, 512  ;;  %s1064_s22 = scalar_lea.hbm %s1435_s2, 1024 }
 0x3de   : > { %p1061_p9 = scmp.ne.s32.totalorder %s1358_s6, %s1060_s27  ;;  %p1065_p0 = scmp.lt.u32.totalorder %s1358_s6, %s1435_s2 }
 0x3df   : > { %p1066_p1 = scmp.lt.u32.totalorder %s1064_s22, %s1060_s27  ;;  %p1068_p4 = scmp.lt.u32.totalorder %s1060_s27, %s1358_s6 }
 0x3e0   : > { %p1062_p2 = pnand %p1061_p9, %p1273_p12 }
 0x3e1   : > { %p1067_p11 = por %p1066_p1, %p1065_p0 }
 0x3e2   : > { %p1063_p5 = pneg %p1062_p2 }
 0x3e3   : > { %p1069_p6 = por %p1068_p4, %p1067_p11 }
 0x3e5   : > { %p1070_p8 = pnand %p1069_p6, %p1063_p5 }
 0x3e7   : > { %1073 = shalt.err (!%p1070_p8)
}
 0x3e8   : > { %s1158_s20 = smov 128   ;;  %s1159_s25 = smov 256   ;;  %v623_v41 = vpop.permute.xlu0 %622  ;;  %v674_v48 = vpop.permute.xlu1 %673 }
 0x3e9   : > { %s1160_s26 = smov 8   ;;  %s848_s4 = sshll.u32 %s1203_s16, 4 }
 0x3ea   : > { %912 = dma.vmem_to_hbm [thread:$0]  (%p1273_p12), %s1352_s30, 512, %s1358_s6, %s692_s7, %s1158_s20, %s1159_s25, %s1160_s26  }
 0x3eb   : > { %s207_s8 = scalar_lea.vmem [#allocation8], %s1318_s23  ;;  %s1389_s9 = scalar_lea.hbm %s1436_s3, %s848_s4 }
 0x3ec   : > { %s724_s30 = sshll.u32 %s207_s8, 4  ;;  %v687_v56 = vpop.permute.xlu0 %686  ;;  %s697_s10 = scalar_lea.sflag [#allocation9], %s1318_s23  ;;  %s1391_s30 = int_to_ptr.vmem [resolvable:$true] %s724_s30 }
 0x3ed   : > { %s1074_s11 = scalar_lea.vmem %s1391_s30, 16  ;;  %s1161_s16 = smov [#allocation8]  }
 0x3ee   : > { %p1075_p10 = scmp.ne.s32.totalorder %s1391_s30, %s1074_s11  ;;  %s1078_s27 = sshll.u32 %s1161_s16, 4  ;;  %s1079_s27 = int_to_ptr.vmem [resolvable:$false] %s1078_s27 }
 0x3ef   : > { %s1080_s28 = scalar_lea.vmem %s1079_s27, 32  ;;  %p1081_p7 = scmp.lt.s32.totalorder %s1391_s30, %s1079_s27 }
 0x3f0   : > { %p1076_p13 = pnand %p1075_p10, %p1273_p12  ;;  %p1082_p9 = scmp.lt.s32.totalorder %s1080_s28, %s1074_s11 }
 0x3f2   : > { %p1077_p3 = pneg %p1076_p13  ;;  %p1083_p2 = por %p1082_p9, %p1081_p7 }
 0x3f4   : > { %p1084_p5 = pnand %p1083_p2, %p1077_p3 }
 0x4ae   : > { %v663_v42 = vpop.f32.mrb[4].mxu1 }
 0x4af   : > { %v664_v43 = vadd.f32 %v663_v42, %v623_v41  ;;  %v904_v44 = vpop.f32.mrb[5].mxu1 }
 0x4b0   : > { %v666_v45 = vpop.f32.mrb[6].mxu1 }
 0x4b1   : > { %v669_v46 = vmax.f32 %v664_v43, 0.0  ;;  %v905_v47 = vpop.f32.mrb[7].mxu1 }
 0x4b3   : > { %v676_v49 = vmul.f32 %v674_v48, %v669_v46 }
 0x4b5   : > { %v677_v50 = vrot.slane %v676_v49, 4 }
 0x4b7   : > { %v678_v51 = vadd.f32 %v677_v50, %v676_v49 }
 0x4b9   : > { %v679_v52 = vrot.slane %v678_v51, 2 }
 0x4bb   : > { %v680_v53 = vadd.f32 %v679_v52, %v678_v51 }
 0x4bd   : > { %v681_v54 = vrot.slane %v680_v53, 1 }
 0x4bf   : > { %v682_v55 = vadd.f32 %v681_v54, %v680_v53 }
 0x4c1   : > { %v689_v57 = vadd.f32 %v687_v56, %v682_v55 }
 0x4c3   : > { %690 = vst [vmem:[%s207_s8] sm:$0x1] %v689_v57 }
 0x4c4   : > { %1087 = shalt.err (!%p1084_p5)
}
 0x4c5   : > { %s1088_s23 = scalar_lea.hbm %s1389_s9, 16  ;;  %s1092_s5 = scalar_lea.hbm %s1436_s3, 32 }
 0x4c6   : > { %p1089_p0 = scmp.ne.s32.totalorder %s1389_s9, %s1088_s23  ;;  %p1093_p4 = scmp.lt.u32.totalorder %s1389_s9, %s1436_s3 }
 0x4c7   : > { %p1094_p6 = scmp.lt.u32.totalorder %s1092_s5, %s1088_s23  ;;  %p1096_p10 = scmp.lt.u32.totalorder %s1088_s23, %s1389_s9 }
 0x4c8   : > { %p1090_p1 = pnand %p1089_p0, %p1273_p12 }
 0x4c9   : > { %p1095_p8 = por %p1094_p6, %p1093_p4 }
 0x4ca   : > { %p1091_p11 = pneg %p1090_p1 }
 0x4cb   : > { %p1097_p13 = por %p1096_p10, %p1095_p8 }
 0x4cd   : > { %p1098_p3 = pnand %p1097_p13, %p1091_p11 }
 0x4cf   : > { %1101 = shalt.err (!%p1098_p3)
}
 0x4d0   : > { %913 = dma.vmem_to_hbm [thread:$0]  (%p1273_p12), %s1391_s30, 16, %s1389_s9, %s697_s10  }
 0x4d1 PF: > { %s736_s25 = sand.u32 1, %s1136_s12   ;;  %p1451_p7 = scmp.ne.s32.totalorder %s1441_s19, 0 }
 0x4d2   : > { %p1452_p9 = scmp.ge.s32.totalorder %s1148_s15, 2  ;;  %s737_s26 = scalar_lea.sflag [#allocation4], %s736_s25 }
 0x4d4   : > { %p925_p2 = pnand %p1452_p9, %p1451_p7 }
 0x4d6   : > { %1127 = dma.done.wait (!%p925_p2), %s737_s26, 512  }
 0x4d7   : > { %1129 = vsyncadd (!%p925_p2), %s737_s26, 4294966784  ;;  %s746_s4 = scalar_lea.sflag [#allocation9], %s736_s25 }
 0x4d8   : > { %1131 = dma.done.wait (!%p925_p2), %s746_s4, 16  }
 0x4d9   : > { %1133 = vsyncadd (!%p925_p2), %s746_s4, 4294967280  ;;  %p21_p12 = scmp.ge.s32.totalorder %s1238_s24, 4   ;;  %s1453_s12 = smov %s1140_s13 }
 0x4da   : > { %s1454_s13 = smov %s1144_s14  ;;  %s1455_s14 = smov %s1269_s17 }
 0x4db   : > { %s1456_s15 = smov %s1238_s24  ;;  %23 = sbr.rel (!%p21_p12) target bundleno = 8 (0x8), region = 94 }
 0x4e2   :  { %750 = vsyncpa [#allocation3], 1 }
 0x4e3   :  { %752 = vsyncpa [#allocation3 + $0x1], 1 }
 0x4e4   :  { %753 = vsyncpa [#allocation6], 1 }
 0x4e5   :  { %754 = vsyncpa [#allocation4], 1 }
 0x4e6   :  { %756 = vsyncpa [#allocation4 + $0x1], 1 }
 0x4e7   :  { %757 = vsyncpa [#allocation9], 1 }
 0x4e8   :  { %759 = vsyncpa [#allocation9 + $0x1], 1 }

</bundles_post_ra>
